<compile_context>
chip_gen: v7x
topology: tpu7x:2x2x1
jax: 0.10.0
libtpu: 0.0.40
codegen_flags: <defaults>
</compile_context>

<pallas_src>
import math

import jax
import jax.numpy as jnp
from jax.experimental import pallas as pl
from jax.experimental.pallas import tpu as pltpu


def _drop_path_kernel(x_ref, scale_ref, o_ref):
    """o = x * scale  (per-sample scale broadcast over the feature axis).

    x_ref     : VMEM (TB, TD) tile of the flattened input
    scale_ref : VMEM (TB, 1)  f32 per-sample scale (0 or 1/keep_prob)
    o_ref     : VMEM (TB, TD) tile of the output
    """
    o_ref[...] = (x_ref[...].astype(jnp.float32) * scale_ref[...]).astype(o_ref.dtype)


def _vmem_budget_bytes():
    """Per-generation scoped-VMEM limit and per-block byte budget."""
    try:
        cap = int(pltpu.get_tpu_info().vmem_capacity_bytes)
    except Exception:
        cap = 64 * 1024 * 1024  # conservative (v7x per-TC) fallback
    # Scoped limit: half of physical, never above 48 MiB (=> 32 MiB on v7x).
    vmem_limit = min(cap // 2, 48 * 1024 * 1024)
    # Per-block budget: pipelined x + out double buffers ~= 4 blocks; keep the
    # total comfortably under the limit (review target: ~4 MiB blocks).
    block_budget = min(4 * 1024 * 1024, vmem_limit // 8)
    return vmem_limit, block_budget


def _largest_aligned_divisor(extent, base, cap):
    """Largest divisor of `extent` that is a multiple of `base` and <= cap (0 if none)."""
    best = 0
    i = 1
    while i * i <= extent:
        if extent % i == 0:
            for d in (i, extent // i):
                if d % base == 0 and d <= cap and d > best:
                    best = d
        i += 1
    return best


def _pick_tiles(B, D, itemsize, block_budget):
    """Choose (TB, TD) obeying the (8,128)/full-extent rule and the VMEM budget."""
    # Sublane packing requirement for the second-to-last block dim.
    if itemsize >= 4:
        sub = 8
    elif itemsize == 2:
        sub = 16
    else:
        sub = 32

    row_bytes = max(1, D * itemsize)

    # --- lane (last) block dim ---------------------------------------------
    if sub * row_bytes <= block_budget:
        # Full contiguous rows: one descriptor per block, no strided copies.
        TD = D
    else:
        # A single row-group is too big: split D into 128-multiples.
        cap_elems = max(128, (block_budget // (sub * itemsize)) // 128 * 128)
        TD = _largest_aligned_divisor(D, 128, cap_elems)
        if TD == 0:
            TD = cap_elems  # masked last feature block via cdiv grid

    # --- batch (second-to-last) block dim ----------------------------------
    rows_cap = max(sub, (block_budget // max(1, TD * itemsize)) // sub * sub)
    if B <= sub:
        TB = B  # tiny batch: full-extent block (always within budget)
    else:
        cap = rows_cap
        if B >= 2 * sub:
            # Keep >= 2 grid programs along the batch axis (v7x megacore).
            cap = min(cap, max(sub, ((B // 2) // sub) * sub))
        TB = _largest_aligned_divisor(B, sub, cap)
        if TB == 0:
            TB = cap  # masked last batch block via cdiv grid
    return TB, TD


def drop_path_pallas(x, key, drop_prob=0.1, training=True):
    """JAX/Pallas equivalent of timm's drop_path.

    x   : array with leading batch dim (e.g. (B, C, H, W))
    key : jax.random.PRNGKey for the per-sample random tensor
    """
    if drop_prob == 0.0 or not training:
        return x
    if drop_prob >= 1.0:
        # Intentional deviation: keep_prob == 0 drops every sample instead of
        # reproducing the reference's divide-by-zero NaNs.
        return jnp.zeros_like(x)

    keep_prob = 1.0 - float(drop_prob)
    orig_shape = x.shape
    B = orig_shape[0]
    D = int(math.prod(orig_shape[1:])) if len(orig_shape) > 1 else 1

    x2d = x.reshape(B, D)  # contiguous (row-major) reshape: no extra HBM pass
    itemsize = jnp.dtype(x.dtype).itemsize

    vmem_limit, block_budget = _vmem_budget_bytes()
    TB, TD = _pick_tiles(B, D, itemsize, block_budget)

    # Per-sample scale: floor(keep_prob + U[0,1)) is Bernoulli(keep_prob),
    # multiplied by 1/keep_prob (all in f32, exactly like the reference).
    rand = jax.random.uniform(key, (B,), dtype=jnp.float32)
    scale = (jnp.floor(keep_prob + rand) / keep_prob).reshape(B, 1)

    # Feature axis innermost so the (i, 0) scale block is revisited, not re-DMA'd.
    grid = (pl.cdiv(B, TB), pl.cdiv(D, TD))

    out = pl.pallas_call(
        _drop_path_kernel,
        out_shape=jax.ShapeDtypeStruct((B, D), x.dtype),
        grid_spec=pltpu.PrefetchScalarGridSpec(
            num_scalar_prefetch=0,
            grid=grid,
            in_specs=[
                pl.BlockSpec((TB, TD), lambda i, j: (i, j)),
                pl.BlockSpec((TB, 1), lambda i, j: (i, 0)),
            ],
            out_specs=pl.BlockSpec((TB, TD), lambda i, j: (i, j)),
        ),
        compiler_params=pltpu.CompilerParams(
            dimension_semantics=("parallel", "parallel"),
            vmem_limit_bytes=vmem_limit,
        ),
        cost_estimate=pl.CostEstimate(
            flops=B * D,
            transcendentals=0,
            bytes_accessed=2 * B * D * itemsize + B * 4,
        ),
    )(x2d, scale)

    return out.reshape(orig_shape)


class DropPath:
    """Mirror of the PyTorch DropPath module (training-mode forward)."""

    def __init__(self, drop_prob: float = 0.1):
        self.drop_prob = drop_prob
        self.training = True

    def __call__(self, x, key):
        return drop_path_pallas(x, key, self.drop_prob, self.training)


if __name__ == "__main__":
    root = jax.random.PRNGKey(0)
    kx, kdrop, kx2, kx3, kx4 = jax.random.split(root, 5)

    module = DropPath(drop_prob=0.1)
    keep_prob = 1.0 - module.drop_prob

    def ref_drop_path(x, key):
        rand = jax.random.uniform(key, (x.shape[0],), dtype=jnp.float32)
        scale = (jnp.floor(keep_prob + rand) / keep_prob).reshape(
            (x.shape[0],) + (1,) * (x.ndim - 1)
        )
        return (x.astype(jnp.float32) * scale).astype(x.dtype)

    # --- test 1: f32 NCHW, lane-aligned D (B=2, C=4, H=16, W=16 -> D=1024) ---
    x = jax.random.normal(kx, (2, 4, 16, 16), dtype=jnp.float32)
    y = jax.block_until_ready(module(x, kdrop))
    assert jnp.allclose(y, ref_drop_path(x, kdrop), atol=1e-6, rtol=1e-6), "f32 mismatch"

    # --- test 2: bf16, D not a multiple of 128 (full-extent lane block) -----
    x2 = jax.random.normal(kx2, (2, 3, 5, 7), dtype=jnp.bfloat16)
    y2 = jax.block_until_ready(module(x2, kdrop))
    assert jnp.allclose(
        y2.astype(jnp.float32),
        ref_drop_path(x2, kdrop).astype(jnp.float32),
        atol=1e-2,
        rtol=1e-2,
    ), "bf16 mismatch"

    # --- test 3: batch big enough for >= 2 grid programs (aligned batch) ----
    x3 = jax.random.normal(kx3, (16, 4, 16, 16), dtype=jnp.float32)
    y3 = jax.block_until_ready(module(x3, kdrop))
    assert jnp.allclose(y3, ref_drop_path(x3, kdrop), atol=1e-6, rtol=1e-6), "B=16 mismatch"

    # --- test 4: unaligned batch -> masked last block via cdiv grid ---------
    x4 = jax.random.normal(kx4, (10, 4, 16, 16), dtype=jnp.float32)
    y4 = jax.block_until_ready(module(x4, kdrop))
    assert jnp.allclose(y4, ref_drop_path(x4, kdrop), atol=1e-6, rtol=1e-6), "B=10 mismatch"

    # --- eval mode / drop_prob=0 is identity ---------------------------------
    module.training = False
    y_eval = jax.block_until_ready(module(x, kdrop))
    assert jnp.array_equal(y_eval, x)

    print("KERNEL_OK")
</pallas_src>

<mosaic_0001>
module attributes {stable_mosaic.version = 11 : i64} {
  func.func @_drop_path_kernel(%arg0: i32, %arg1: i32, %arg2: memref<2x1024xf32, #tpu.memory_space<vmem>>, %arg3: memref<2x1xf32, #tpu.memory_space<vmem>>, %arg4: memref<2x1024xf32, #tpu.memory_space<vmem>>) attributes {dimension_semantics = [#tpu.dimension_semantics<parallel>, #tpu.dimension_semantics<parallel>], iteration_bounds = array<i64: 1, 1>, scalar_prefetch = 0 : i64, scratch_operands = 0 : i64, tpu.core_type = #tpu.core_type<tc>, window_params = [{transform_indices = @transform_0, window_bounds = array<i64: 2, 1024>}, {transform_indices = @transform_1, window_bounds = array<i64: 2, 1>}, {transform_indices = @transform_2, window_bounds = array<i64: 2, 1024>}]} {
    %c0 = arith.constant 0 : index
    %c0_0 = arith.constant 0 : index
    %0 = vector.load %arg2[%c0, %c0_0] : memref<2x1024xf32, #tpu.memory_space<vmem>>, vector<2x1024xf32>
    %c0_1 = arith.constant 0 : index
    %c0_2 = arith.constant 0 : index
    %1 = vector.load %arg3[%c0_1, %c0_2] : memref<2x1xf32, #tpu.memory_space<vmem>>, vector<2x1xf32>
    %2 = vector.broadcast %1 : vector<2x1xf32> to vector<2x1024xf32>
    %3 = arith.mulf %0, %2 : vector<2x1024xf32>
    %c0_3 = arith.constant 0 : index
    %c0_4 = arith.constant 0 : index
    %4 = vector.load %arg4[%c0_3, %c0_4] : memref<2x1024xf32, #tpu.memory_space<vmem>>, vector<2x1024xf32>
    tpu.vector_store %arg4[%c0_3, %c0_4], %3 {strides = array<i32>} : memref<2x1024xf32, #tpu.memory_space<vmem>>, vector<2x1024xf32>,
    return
  }
  func.func @transform_0(%arg0: i32, %arg1: i32) -> (i32, i32) {
    %c0_i32 = arith.constant 0 : i32
    return %arg0, %arg1 : i32, i32
  }
  func.func @transform_1(%arg0: i32, %arg1: i32) -> (i32, i32) {
    %c0_i32 = arith.constant 0 : i32
    %c0_i32_0 = arith.constant 0 : i32
    return %arg0, %c0_i32 : i32, i32
  }
  func.func @transform_2(%arg0: i32, %arg1: i32) -> (i32, i32) {
    %c0_i32 = arith.constant 0 : i32
    return %arg0, %arg1 : i32, i32
  }
}

</mosaic_0001>

<bundles_post_ra>
// kernel: tpu_custom_call.1
= control target key start
LH: loop header
LB: loop body
LE: loop exit
PB: predicated region body
PF: predicated region fallthrough
CT: control target
= control target key end

     0   :  { %7 = vsyncpa [#allocation3], 0  ;;  %s157_s0 = inlined_call_operand.hbm [shape: f32[2,1024], index: 0, kind: input, shape index: {}]   ;;  %s158_s1 = inlined_call_operand.vmem [shape: f32[2,1], index: 1, kind: input, shape index: {}]   ;;  %s159_s2 = inlined_call_operand.hbm [shape: f32[2,1024], index: 2, kind: output, shape index: {}]  }
   0x1   :  { %8 = vsyncpa [#allocation4], 0  ;;  %s111_s9 = smov [#allocation2]   ;;  %s63_s13 = scalar_lea.hbm %s157_s0, 256 }
   0x2   :  { %s15_s10 = sshll.u32 %s111_s9, 4  ;;  %p64_p0 = scmp.ne.s32.totalorder %s157_s0, %s63_s13  ;;  %s16_s10 = int_to_ptr.vmem [resolvable:$true] %s15_s10 }
   0x3   :  { %p67_p1 = scmp.lt.u32.totalorder %s63_s13, %s157_s0 }
   0x5   :  { %p69_p2 = pnand %p67_p1, %p64_p0 }
   0x7   :  { %72 = shalt.err (!%p69_p2)
}
   0x8   :  { %s73_s18 = scalar_lea.vmem %s16_s10, 256  ;;  %p78_p4 = scmp.lt.s32.totalorder %s16_s10, %s16_s10 }
   0x9   :  { %p74_p3 = scmp.ne.s32.totalorder %s16_s10, %s73_s18  ;;  %p79_p5 = scmp.lt.s32.totalorder %s73_s18, %s73_s18 }
   0xb   :  { %p80_p6 = por %p79_p5, %p78_p4 }
   0xd   :  { %p81_p7 = pnand %p80_p6, %p74_p3 }
   0xf   :  { %84 = shalt.err (!%p81_p7)
}
  0x10   :  { %18 = dma.hbm_to_vmem [thread:$0]  %s157_s0, 256, %s16_s10, [#allocation3]  }
  0x11   :  { %107 = dma.done.wait [#allocation3], 256  }
  0x12   :  { %108 = vsyncadd [#allocation3], 4294967040  ;;  %v112_v0 = vmov 0   ;;  %v26_v1 = vld [vmem:[%s158_s1] sm:$0x3]  ;;  %v34_v4 = vlaneseq  ;;  %v25_v10 = vld [vmem:[#allocation2 + $0x8] sm:$0xff] }
  0x13   :  { %62 = vset.pattern.permute.xlu0 %v112_v0  ;;  %v113_v2 = vmov 269488144   ;;  %v24_v9 = vld [vmem:[#allocation2] sm:$0xff]  ;;  %s114_s23 = smov [#allocation5]  }
  0x14   :  { %29 = vperm.xlu0 %62, %v26_v1   ;;  %v32_v3 = vunpack.c.l.s4 %v113_v2  ;;  %v35_v6 = vshrl.u32 %v34_v4, 7  ;;  %s49_s0 = sshll.u32 %s114_s23, 4  ;;  %s50_s0 = int_to_ptr.vmem [resolvable:$true] %s49_s0 }
  0x15   :  { %s85_s24 = scalar_lea.vmem %s50_s0, 256  ;;  %p90_p9 = scmp.lt.s32.totalorder %s50_s0, %s50_s0 }
  0x16   :  { %v33_v5 = vunpack.c.0.s8 %v32_v3  ;;  %p86_p8 = scmp.ne.s32.totalorder %s50_s0, %s85_s24  ;;  %p91_p10 = scmp.lt.s32.totalorder %s85_s24, %s85_s24 }
  0x18   :  { %v36_v7 = vsub.s32 %v33_v5, %v35_v6  ;;  %p92_p11 = por %p91_p10, %p90_p9 }
  0x1a   :  { %p93_p12 = pnand %p92_p11, %p86_p8 }
  0x93   :  { %v30_v8 = vpop.permute.xlu0 %29 }
  0x94   :  { %v37_v11 = vrot.slane %v30_v8, %v36_v7 }
  0x96   :  { %v39_v12 = vmul.f32 %v37_v11, %v24_v9  ;;  %v40_v13 = vmul.f32 %v37_v11, %v25_v10 }
  0x98   :  { %41 = vst [vmem:[#allocation5] sm:$0xff] %v39_v12  ;;  %42 = vst [vmem:[#allocation5 + $0x8] sm:$0xff] %v40_v13 }
  0x99   :  { %96 = shalt.err (!%p93_p12)
}
  0x9a   :  { %s97_s26 = scalar_lea.hbm %s159_s2, 256 }
  0x9b   :  { %p98_p13 = scmp.ne.s32.totalorder %s159_s2, %s97_s26  ;;  %p101_p0 = scmp.lt.u32.totalorder %s97_s26, %s159_s2 }
  0x9d   :  { %p103_p1 = pnand %p101_p0, %p98_p13 }
  0x9f   :  { %106 = shalt.err (!%p103_p1)
}
  0xa0   :  { %52 = dma.vmem_to_hbm [thread:$0]  %s50_s0, 256, %s159_s2, [#allocation4]  }
  0xa1   :  { %109 = dma.done.wait [#allocation4], 256  }
  0xa2   :  { %110 = vsyncadd [#allocation4], 4294967040 }
  0xa3   :  { %56 = vsyncpa [#allocation3], 1 }
  0xa4   :  { %57 = vsyncpa [#allocation4], 1 }

</bundles_post_ra>
